<compile_context>
chip_gen: v6e
topology: v6e:2x2x1
jax: 0.10.0
libtpu: 0.0.40
codegen_flags: <defaults>
</compile_context>

<pallas_src>
import functools

import jax
import jax.numpy as jnp
from jax import lax
from jax.experimental import pallas as pl
from jax.experimental.pallas import tpu as pltpu

NUM_BITS = 8                      # num_bits=8 in the module
_QMAX = float(2 ** NUM_BITS - 1)  # 255.0


def _round_up(x, m):
    return (x + m - 1) // m * m


def _minmax_scale(t):
    """Per-tensor min and 8-bit uniform scale (global reductions, plain JAX)."""
    tmin = jnp.min(t).astype(jnp.float32)
    tmax = jnp.max(t).astype(jnp.float32)
    scale = (tmax - tmin) / _QMAX
    scale = jnp.where(scale <= 0.0, jnp.float32(1.0), scale)
    return tmin, scale


def _fake_quant_dq(t):
    """Per-tensor uniform fake quantization (quantize -> dequantize), f32."""
    tmin, scale = _minmax_scale(t)
    inv_scale = 1.0 / scale
    q = jnp.clip(jnp.round((t - tmin) * inv_scale), 0.0, _QMAX)
    return q * scale + tmin


def _qlinear_kernel(qp_ref, x_ref, w_ref, b_ref, o_ref, acc_ref):
    k = pl.program_id(2)

    @pl.when(k == 0)
    def _init():
        acc_ref[...] = jnp.zeros_like(acc_ref)

    # Elementwise fake-quant of the x tile with precomputed per-tensor scalars
    # read from SMEM (x_min, x_scale, 1/x_scale).  Pure VPU/EUP-free work that
    # hides under the MXU contraction below.
    x_min = qp_ref[0]
    x_scale = qp_ref[1]
    x_inv_scale = qp_ref[2]
    x = x_ref[...]
    q = jnp.clip(jnp.round((x - x_min) * x_inv_scale), 0.0, _QMAX)
    qx = (q * x_scale + x_min).astype(w_ref.dtype)

    # x:(tm, tk) contracted with W:(tn, tk) along dim 1 -> (tm, tn).
    # No explicit transpose; the MXU is fed with W in its natural (Out, In)
    # layout.
    acc_ref[...] += lax.dot_general(
        qx, w_ref[...],
        dimension_numbers=(((1,), (1,)), ((), ())),
        preferred_element_type=jnp.float32)

    @pl.when(k == pl.num_programs(2) - 1)
    def _finalize():
        o_ref[...] = (acc_ref[...] + b_ref[...].astype(jnp.float32)
                      ).astype(o_ref.dtype)


@functools.partial(jax.jit,
                   static_argnames=("compute_dtype", "tm_max", "tn_max", "tk_max"))
def quantized_linear(x, weight, bias, *, compute_dtype=jnp.bfloat16,
                     tm_max=256, tn_max=512, tk_max=512):
    """Quantized nn.Linear forward: fake_quant8(x) @ fake_quant8(W).T + b.

    x: (B, In) f32, weight: (Out, In) f32, bias: (Out,) f32 -> (B, Out) f32.
    """
    B, In = x.shape
    Out = weight.shape[0]

    # ---- hoisted global reductions / full weight fake-quant (plain JAX) ----
    x_min, x_scale = _minmax_scale(x)
    qparams = jnp.stack([x_min, x_scale, 1.0 / x_scale]).astype(jnp.float32)
    w_q = _fake_quant_dq(weight.astype(jnp.float32)).astype(compute_dtype)

    # ---- lane-dense padding + per-generation-safe tile sizes ----
    tm = min(tm_max, _round_up(B, 8))
    tn = min(tn_max, _round_up(Out, 128))
    tk = min(tk_max, _round_up(In, 128))
    Mp = _round_up(B, tm)
    Np = _round_up(Out, tn)
    Kp = _round_up(In, tk)

    # Padded weight columns are exact zeros, so the (nonzero) fake-quantized
    # padding of x contributes exactly zero to the contraction.  Padded M rows
    # and N columns are sliced off at the end.
    x_p = jnp.zeros((Mp, Kp), jnp.float32).at[:B, :In].set(x.astype(jnp.float32))
    w_p = jnp.zeros((Np, Kp), compute_dtype).at[:Out, :In].set(w_q)
    b_p = jnp.zeros((1, Np), jnp.float32).at[0, :Out].set(bias.astype(jnp.float32))

    grid = (Mp // tm, Np // tn, Kp // tk)

    cost = pl.CostEstimate(
        flops=2 * Mp * Np * Kp,
        transcendentals=0,
        bytes_accessed=(x_p.size * 4 + w_p.size * w_p.dtype.itemsize
                        + b_p.size * 4 + Mp * Np * 4),
    )

    out = pl.pallas_call(
        _qlinear_kernel,
        out_shape=jax.ShapeDtypeStruct((Mp, Np), jnp.float32),
        grid_spec=pltpu.PrefetchScalarGridSpec(
            num_scalar_prefetch=0,
            grid=grid,
            in_specs=[
                # (x_min, x_scale, 1/x_scale) live in SMEM, read as scalars.
                pl.BlockSpec(memory_space=pltpu.MemorySpace.SMEM),
                pl.BlockSpec((tm, tk), lambda i, j, k: (i, k)),   # x tile
                pl.BlockSpec((tn, tk), lambda i, j, k: (j, k)),   # W tile
                pl.BlockSpec((1, tn), lambda i, j, k: (0, j)),    # bias tile
            ],
            out_specs=pl.BlockSpec((tm, tn), lambda i, j, k: (i, j)),
            scratch_shapes=[pltpu.VMEM((tm, tn), jnp.float32)],
        ),
        compiler_params=pltpu.CompilerParams(
            dimension_semantics=("parallel", "parallel", "arbitrary"),
            vmem_limit_bytes=32 * 1024 * 1024,
        ),
        cost_estimate=cost,
    )(qparams, x_p, w_p, b_p)

    return out[:B, :Out]


# ----------------------------- references ---------------------------------

def _reference_f32(x, weight, bias):
    """Pure-f32 equivalent of the PyTorch forward."""
    qx = _fake_quant_dq(x)
    qw = _fake_quant_dq(weight)
    return qx @ qw.T + bias[None, :]


def _reference_emulated(x, weight, bias, compute_dtype):
    """Emulates the kernel numerics: fake-quant in f32, MXU operands cast to
    compute_dtype, f32 accumulation."""
    qx = _fake_quant_dq(x).astype(compute_dtype).astype(jnp.float32)
    qw = _fake_quant_dq(weight).astype(compute_dtype).astype(jnp.float32)
    return qx @ qw.T + bias[None, :]


if __name__ == "__main__":
    key = jax.random.PRNGKey(0)
    kx, kw, kb = jax.random.split(key, 3)

    # Module: Linear(in_features=3, out_features=3); pick batch=8.
    batch, in_features, out_features = 8, 3, 3

    x = jax.random.normal(kx, (batch, in_features), dtype=jnp.float32)
    # Deterministic parameter init (fan_in-based bounds like nn.Linear).
    bound = 1.0 / (in_features ** 0.5)
    weight = jax.random.uniform(kw, (out_features, in_features),
                                dtype=jnp.float32, minval=-bound, maxval=bound)
    bias = jax.random.uniform(kb, (out_features,), dtype=jnp.float32,
                              minval=-bound, maxval=bound)

    out = quantized_linear(x, weight, bias)
    out = jax.block_until_ready(out)
    assert out.shape == (batch, out_features)

    # Tight check against a reference emulating the bf16 MXU operand cast.
    ref_emul = _reference_emulated(x, weight, bias, jnp.bfloat16)
    assert jnp.allclose(out, ref_emul, atol=1e-3, rtol=1e-3)

    # Loose check against the pure-f32 PyTorch-equivalent reference (bf16 MXU
    # operands add ~2^-8 relative error on top of the 8-bit fake quant).
    ref_f32 = _reference_f32(x, weight, bias)
    assert jnp.allclose(out, ref_f32, atol=5e-2, rtol=5e-2)

    print("KERNEL_OK")
</pallas_src>

<mosaic_0001>
module attributes {stable_mosaic.version = 11 : i64} {
  func.func @_qlinear_kernel(%arg0: i32, %arg1: i32, %arg2: i32, %arg3: memref<3xf32, #tpu.memory_space<smem>>, %arg4: memref<8x128xf32, #tpu.memory_space<vmem>>, %arg5: memref<128x128xbf16, #tpu.memory_space<vmem>>, %arg6: memref<1x128xf32, #tpu.memory_space<vmem>>, %arg7: memref<8x128xf32, #tpu.memory_space<vmem>>, %arg8: memref<8x128xf32, #tpu.memory_space<vmem>>) attributes {dimension_semantics = [#tpu.dimension_semantics<parallel>, #tpu.dimension_semantics<parallel>, #tpu.dimension_semantics<arbitrary>], iteration_bounds = array<i64: 1, 1, 1>, scalar_prefetch = 0 : i64, scratch_operands = 1 : i64, tpu.core_type = #tpu.core_type<tc>, window_params = [{transform_indices = @transform_0, window_bounds = array<i64: 3>}, {transform_indices = @transform_1, window_bounds = array<i64: 8, 128>}, {transform_indices = @transform_2, window_bounds = array<i64: 128, 128>}, {transform_indices = @transform_3, window_bounds = array<i64: 1, 128>}, {transform_indices = @transform_4, window_bounds = array<i64: 8, 128>}]} {
    %c0_i32 = arith.constant 0 : i32
    %0 = arith.cmpi eq, %arg2, %c0_i32 : i32
    %1 = arith.extui %0 : i1 to i32
    %c0_i32_0 = arith.constant 0 : i32
    %2 = arith.cmpi ne, %1, %c0_i32_0 : i32
    scf.if %2 {
      %cst_13 = arith.constant 0.000000e+00 : f32
      %29 = vector.broadcast %cst_13 : f32 to vector<8x128xf32>
      %c0_14 = arith.constant 0 : index
      %c0_15 = arith.constant 0 : index
      %30 = vector.load %arg8[%c0_14, %c0_15] : memref<8x128xf32, #tpu.memory_space<vmem>>, vector<8x128xf32>
      tpu.vector_store %arg8[%c0_14, %c0_15], %29 {strides = array<i32>} : memref<8x128xf32, #tpu.memory_space<vmem>>, vector<8x128xf32>,
    } else {
    }
    %c0 = arith.constant 0 : index
    %3 = memref.load %arg3[%c0] : memref<3xf32, #tpu.memory_space<smem>>
    %c1 = arith.constant 1 : index
    %4 = memref.load %arg3[%c1] : memref<3xf32, #tpu.memory_space<smem>>
    %c2 = arith.constant 2 : index
    %5 = memref.load %arg3[%c2] : memref<3xf32, #tpu.memory_space<smem>>
    %c0_1 = arith.constant 0 : index
    %c0_2 = arith.constant 0 : index
    %6 = vector.load %arg4[%c0_1, %c0_2] : memref<8x128xf32, #tpu.memory_space<vmem>>, vector<8x128xf32>
    %7 = vector.broadcast %3 : f32 to vector<8x128xf32>
    %8 = arith.subf %6, %7 : vector<8x128xf32>
    %9 = vector.broadcast %5 : f32 to vector<8x128xf32>
    %10 = arith.mulf %8, %9 : vector<8x128xf32>
    %11 = math.roundeven %10 : vector<8x128xf32>
    %cst = arith.constant 0.000000e+00 : f32
    %cst_3 = arith.constant 2.550000e+02 : f32
    %12 = vector.broadcast %cst : f32 to vector<8x128xf32>
    %13 = arith.maximumf %12, %11 : vector<8x128xf32>
    %14 = vector.broadcast %cst_3 : f32 to vector<8x128xf32>
    %15 = arith.minimumf %14, %13 : vector<8x128xf32>
    %16 = vector.broadcast %4 : f32 to vector<8x128xf32>
    %17 = arith.mulf %15, %16 : vector<8x128xf32>
    %18 = vector.broadcast %3 : f32 to vector<8x128xf32>
    %19 = arith.addf %17, %18 : vector<8x128xf32>
    %20 = arith.truncf %19 : vector<8x128xf32> to vector<8x128xbf16>
    %c0_4 = arith.constant 0 : index
    %c0_5 = arith.constant 0 : index
    %21 = vector.load %arg8[%c0_4, %c0_5] : memref<8x128xf32, #tpu.memory_space<vmem>>, vector<8x128xf32>
    %c0_6 = arith.constant 0 : index
    %c0_7 = arith.constant 0 : index
    %22 = vector.load %arg5[%c0_6, %c0_7] : memref<128x128xbf16, #tpu.memory_space<vmem>>, vector<128x128xbf16>
    %cst_8 = arith.constant dense<0.000000e+00> : vector<8x128xf32>
    %23 = tpu.matmul %20, %22, %cst_8 {dimension_numbers = #tpu.dot_dimension_numbers<[1], [1], [0], [0], [0, 0, 1, 0], [], []>} : vector<8x128xbf16>, vector<128x128xbf16>, vector<8x128xf32> -> vector<8x128xf32>
    %24 = arith.addf %21, %23 : vector<8x128xf32>
    %c0_9 = arith.constant 0 : index
    %c0_10 = arith.constant 0 : index
    %25 = vector.load %arg8[%c0_9, %c0_10] : memref<8x128xf32, #tpu.memory_space<vmem>>, vector<8x128xf32>
    tpu.vector_store %arg8[%c0_9, %c0_10], %24 {strides = array<i32>} : memref<8x128xf32, #tpu.memory_space<vmem>>, vector<8x128xf32>,
    %c0_i32_11 = arith.constant 0 : i32
    %26 = arith.cmpi eq, %arg2, %c0_i32_11 : i32
    %27 = arith.extui %26 : i1 to i32
    %c0_i32_12 = arith.constant 0 : i32
    %28 = arith.cmpi ne, %27, %c0_i32_12 : i32
    scf.if %28 {
      %c0_13 = arith.constant 0 : index
      %c0_14 = arith.constant 0 : index
      %29 = vector.load %arg8[%c0_13, %c0_14] : memref<8x128xf32, #tpu.memory_space<vmem>>, vector<8x128xf32>
      %c0_15 = arith.constant 0 : index
      %c0_16 = arith.constant 0 : index
      %30 = vector.load %arg6[%c0_15, %c0_16] : memref<1x128xf32, #tpu.memory_space<vmem>>, vector<1x128xf32>
      %31 = vector.broadcast %30 : vector<1x128xf32> to vector<8x128xf32>
      %32 = arith.addf %29, %31 : vector<8x128xf32>
      %c0_17 = arith.constant 0 : index
      %c0_18 = arith.constant 0 : index
      %33 = vector.load %arg7[%c0_17, %c0_18] : memref<8x128xf32, #tpu.memory_space<vmem>>, vector<8x128xf32>
      tpu.vector_store %arg7[%c0_17, %c0_18], %32 {strides = array<i32>} : memref<8x128xf32, #tpu.memory_space<vmem>>, vector<8x128xf32>,
    } else {
    }
    return
  }
  func.func @transform_0(%arg0: i32, %arg1: i32, %arg2: i32) -> i32 {
    %c0_i32 = arith.constant 0 : i32
    %c0_i32_0 = arith.constant 0 : i32
    return %c0_i32 : i32
  }
  func.func @transform_1(%arg0: i32, %arg1: i32, %arg2: i32) -> (i32, i32) {
    %c0_i32 = arith.constant 0 : i32
    return %arg0, %arg2 : i32, i32
  }
  func.func @transform_2(%arg0: i32, %arg1: i32, %arg2: i32) -> (i32, i32) {
    %c0_i32 = arith.constant 0 : i32
    return %arg1, %arg2 : i32, i32
  }
  func.func @transform_3(%arg0: i32, %arg1: i32, %arg2: i32) -> (i32, i32) {
    %c0_i32 = arith.constant 0 : i32
    %c0_i32_0 = arith.constant 0 : i32
    return %c0_i32, %arg1 : i32, i32
  }
  func.func @transform_4(%arg0: i32, %arg1: i32, %arg2: i32) -> (i32, i32) {
    %c0_i32 = arith.constant 0 : i32
    return %arg0, %arg1 : i32, i32
  }
}

</mosaic_0001>

<bundles_post_ra>
// kernel: quantized_linear.1
= control target key start
LH: loop header
LB: loop body
LE: loop exit
PB: predicated region body
PF: predicated region fallthrough
CT: control target
= control target key end

     0   :  { %9 = vsyncpa [#allocation4], 0  ;;  %s316_s0 = inlined_call_operand.vmem [shape: f32[3], index: 0, kind: input, shape index: {}]   ;;  %s317_s1 = inlined_call_operand.vmem [shape: f32[8,128], index: 1, kind: input, shape index: {}]   ;;  %s318_s2 = inlined_call_operand.vmem [shape: bf16[128,128], index: 2, kind: input, shape index: {}]   ;;  %s319_s3 = inlined_call_operand.vmem [shape: f32[1,128], index: 3, kind: input, shape index: {}]   ;;  %s320_s4 = inlined_call_operand.vmem [shape: f32[8,128], index: 4, kind: output, shape index: {}]  }
   0x1   :  { %s16_s17 = sshll.u32 %s316_s0, 4  ;;  %s17_s17 = int_to_ptr.vmem [resolvable:$true] %s16_s17 }
   0x2   :  { %s235_s18 = scalar_lea.vmem %s17_s17, 16  ;;  %p240_p1 = scmp.lt.s32.totalorder %s17_s17, %s17_s17 }
   0x3   :  { %p236_p0 = scmp.ne.s32.totalorder %s17_s17, %s235_s18  ;;  %p241_p2 = scmp.lt.s32.totalorder %s235_s18, %s235_s18 }
   0x5   :  { %p242_p3 = por %p241_p2, %p240_p1 }
   0x7   :  { %p243_p4 = pnand %p242_p3, %p236_p0 }
   0x9   :  { %246 = shalt.err (!%p243_p4)
}
   0xa   :  { %s249_s19 = smov [#allocation3]  }
   0xb   :  { %19 = dma.vmem_to_smem %s17_s17, 16, %s249_s19, [#allocation4]  }
   0xc   :  { %247 = dma.done.wait [#allocation4], 16  }
   0xd   :  { %248 = vsyncadd [#allocation4], 4294967280 }
   0xe   :  { %29 = sfence }
   0xf   :  { %v227_v0 = vld [vmem:[%s318_s2 + $0x38] sm:$0xff]   ;;  %v250_v1 = vmov 0.0   ;;  %vm251_vm0 = vmmov 0   ;;  %v228_v2 = vld [vmem:[%s318_s2 + $0x30] sm:$0xff]   ;;  %s286_s23 = sld [smem:[#allocation3]]  ;;  %v229_v3 = vld [vmem:[%s318_s2 + $0x28] sm:$0xff]  }
  0x10   :  { %196 = vmatprep.subr.bf16.mxu0 %v250_v1  ;;  %212 = vmatprep.mubr.msk.bf16.mxu0 %vm251_vm0, %v250_v1  ;;  %s177_s24 = sld [smem:[#allocation3 + $0x2]]  ;;  %v39_v4 = vld [vmem:[%s317_s1] sm:$0xff]  ;;  %v231_v11 = vld [vmem:[%s318_s2 + $0x18] sm:$0xff]   ;;  %v232_v16 = vld [vmem:[%s318_s2 + $0x10] sm:$0xff]  }
  0x11   :  { %197 = vmatpush3.bf16.xpose.msra.mxu0 %v227_v0  ;;  %v230_v8 = vld [vmem:[%s318_s2 + $0x20] sm:$0xff]   ;;  %s176_s8 = sld [smem:[#allocation3 + $0x1]]  ;;  %v233_v20 = vld [vmem:[%s318_s2 + $0x8] sm:$0xff]  }
  0x12   :  { %198 = vmatprep.subr.bf16.mxu0 %v250_v1  ;;  %v234_v24 = vld [vmem:[%s318_s2] sm:$0xff]  }
  0x13   :  { %v186_v27 = vld [vmem:[%s319_s3] ss:$0 sm:$0xff] }
  0x15   :  { %v40_v5 = vstv %s286_s23 }
  0x16   :  { %v41_v6 = vsub.f32 %v39_v4, %v40_v5  ;;  %v42_v7 = vstv %s177_s24 }
  0x17   :  { %v47_v22 = vstv %s176_s8 }
  0x18   :  { %v43_v9 = vmul.f32 %v42_v7, %v41_v6 }
  0x19   :  { %199 = vmatpush3.bf16.xpose.msra.mxu0 %v228_v2 }
  0x1a   :  { %200 = vmatprep.subr.bf16.mxu0 %v250_v1  ;;  %v218_v10 = vcvt.f32.s32 %v43_v9  ;;  %v221_v14 = vand.u32 2147483648, %v43_v9  ;;  %v216_v15 = vand.u32 2147483647, %v43_v9 }
  0x1c   :  { %v219_v12 = vcvt.s32.f32 %v218_v10  ;;  %vm217_vm1 = vcmp.lt.f32.partialorder %v216_v15, 8388608.0 }
  0x1e   :  { %v220_v13 = vand.u32 2147483647, %v219_v12 }
  0x20   :  { %v222_v17 = vor.u32 %v221_v14, %v220_v13 }
  0x21   :  { %201 = vmatpush3.bf16.xpose.msra.mxu0 %v229_v3 }
  0x22   :  { %202 = vmatprep.subr.bf16.mxu0 %v250_v1  ;;  %v223_v18 = vsel %vm217_vm1, %v222_v17, %v43_v9 }
  0x23   :  { %v45_v19 = vmax.f32 %v223_v18, 0.0 }
  0x25   :  { %v46_v21 = vmin.f32 %v45_v19, 255.0 }
  0x27   :  { %v48_v23 = vmul.f32 %v47_v22, %v46_v21 }
  0x29   :  { %203 = vmatpush3.bf16.xpose.msra.mxu0 %v230_v8  ;;  %v49_v25 = vadd.f32 %v48_v23, %v40_v5 }
  0x2a   :  { %204 = vmatprep.subr.bf16.mxu0 %v250_v1 }
  0x2b   :  { %v50_v26 = vpack.c.bf16 %v49_v25, %v49_v25 }
  0x31   :  { %205 = vmatpush3.bf16.xpose.msra.mxu0 %v231_v11 }
  0x32   :  { %206 = vmatprep.subr.bf16.mxu0 %v250_v1 }
  0x39   :  { %207 = vmatpush3.bf16.xpose.msra.mxu0 %v232_v16 }
  0x3a   :  { %208 = vmatprep.subr.bf16.mxu0 %v250_v1 }
  0x41   :  { %209 = vmatpush3.bf16.xpose.msra.mxu0 %v233_v20 }
  0x42   :  { %210 = vmatprep.subr.bf16.mxu0 %v250_v1 }
  0x49   :  { %211 = vmatpush3.bf16.xpose.msra.mxu0 %v234_v24 }
  0x50   :  { %213 = vmatmul.mubr.bf16.vlgmr.msra.gmra.mxu0 %v50_v26 }
 0x110   :  { %v150_v28 = vpop.f32.mrf.mxu0 }
 0x111   :  { %v169_v29 = vadd.f32 %v186_v27, %v150_v28 }
 0x112   :  { %v214_v30 = vpop.f32.mrf.mxu0 }
 0x113   :  { %170 = vst [vmem:[%s320_s4] sm:$0xff] %v169_v29 }
 0x114   :  { %v153_v31 = vpop.f32.mrf.mxu0 }
 0x116   :  { %v215_v32 = vpop.f32.mrf.mxu0 }
 0x117   :  { %175 = vsyncpa [#allocation4], 1 }

</bundles_post_ra>
